<compile_context>
chip_gen: v5e
topology: v5e:2x2
jax: 0.10.0
libtpu: 0.0.40
codegen_flags: <defaults>
</compile_context>

<pallas_src>
import functools
import jax
import jax.numpy as jnp
from jax.experimental import pallas as pl
from jax.experimental.pallas import tpu as pltpu


def _round_up(x, m):
    return (x + m - 1) // m * m


# -----------------------------------------------------------------------------
# Conv matmul kernel (single K step): out = BN(ReLU(A @ B + bias))
# A: (tm, Kp) bf16 patches, B: (Kp, Np) bf16 weight, epilogue in f32.
# -----------------------------------------------------------------------------
def _conv_mm_kernel(a_ref, b_ref, bias_ref, scale_ref, shift_ref, o_ref):
    y = jnp.dot(a_ref[...], b_ref[...], preferred_element_type=jnp.float32)
    y = jnp.maximum(y + bias_ref[...], 0.0)        # bias + ReLU
    y = y * scale_ref[...] + shift_ref[...]        # folded BatchNorm (eval)
    o_ref[...] = y


def conv_matmul(a_bf16, b_bf16, bias, scale, shift, *, tm=128):
    Mp, Kp = a_bf16.shape
    _, Np = b_bf16.shape
    grid = (Mp // tm,)
    return pl.pallas_call(
        _conv_mm_kernel,
        out_shape=jax.ShapeDtypeStruct((Mp, Np), jnp.float32),
        grid_spec=pltpu.PrefetchScalarGridSpec(
            num_scalar_prefetch=0,
            grid=grid,
            in_specs=[
                pl.BlockSpec((tm, Kp), lambda i: (i, 0)),
                pl.BlockSpec((Kp, Np), lambda i: (0, 0)),   # weight pinned in VMEM
                pl.BlockSpec((1, Np), lambda i: (0, 0)),
                pl.BlockSpec((1, Np), lambda i: (0, 0)),
                pl.BlockSpec((1, Np), lambda i: (0, 0)),
            ],
            out_specs=pl.BlockSpec((tm, Np), lambda i: (i, 0)),
        ),
        compiler_params=pltpu.CompilerParams(
            dimension_semantics=("parallel",)),
    )(a_bf16, b_bf16, bias, scale, shift)


# -----------------------------------------------------------------------------
# Fused FC head: Linear -> ReLU -> BN1d -> (Dropout=id) -> Linear -> sigmoid
# Single program; all operands fit in VMEM (everything is <=128x128).
# -----------------------------------------------------------------------------
def _fc_kernel(x_ref, w1_ref, b1_ref, scale_ref, shift_ref, w2_ref, b2_ref,
               o_ref, *, sigmoid):
    y = jnp.dot(x_ref[...], w1_ref[...], preferred_element_type=jnp.float32)
    y = jnp.maximum(y + b1_ref[...], 0.0)
    y = y * scale_ref[...] + shift_ref[...]
    z = jnp.dot(y.astype(w2_ref.dtype), w2_ref[...],
                preferred_element_type=jnp.float32)
    z = z + b2_ref[...]
    if sigmoid:
        z = jax.nn.sigmoid(z)
    o_ref[...] = z


def fused_fc(x_bf16, w1, b1, scale1, shift1, w2, b2, *, sigmoid):
    Mp, _ = x_bf16.shape
    Np = w2.shape[1]
    kernel = functools.partial(_fc_kernel, sigmoid=sigmoid)
    return pl.pallas_call(
        kernel,
        out_shape=jax.ShapeDtypeStruct((Mp, Np), jnp.float32),
    )(x_bf16, w1, b1, scale1, shift1, w2, b2)


# -----------------------------------------------------------------------------
# SPP max-pool: elementwise max over window phases, lane-dense output.
# -----------------------------------------------------------------------------
def _spp_max_kernel(x_ref, o_ref):
    m = x_ref[0]
    for p in range(1, x_ref.shape[0]):
        m = jnp.maximum(m, x_ref[p])
    o_ref[...] = m


def spp_max_pool(x_nhwc, level):
    """Adaptive max pool (N,H,W,C) -> flattened (N, C*level*level) in PyTorch
    (C, lh, lw) order. Requires H % level == 0 and W % level == 0."""
    N, H, W, C = x_nhwc.shape
    assert H % level == 0 and W % level == 0
    wh, ww = H // level, W // level
    phases = [
        x_nhwc[:, i::wh, j::ww, :].reshape(N, level * level * C)
        for i in range(wh) for j in range(ww)
    ]
    stacked = jnp.stack(phases, axis=0)          # (wh*ww, N, level*level*C)
    pooled = pl.pallas_call(
        _spp_max_kernel,
        out_shape=jax.ShapeDtypeStruct((N, level * level * C), jnp.float32),
    )(stacked)
    # lane layout is (lh, lw, C); reorder tiny tensor to PyTorch flatten order
    return pooled.reshape(N, level, level, C).transpose(0, 3, 1, 2).reshape(N, -1)


# -----------------------------------------------------------------------------
# Conv2d (valid padding, arbitrary stride) via im2col + fused matmul kernel.
# Patches stay in natural (kh, kw, C) feature order (no activation transpose).
# -----------------------------------------------------------------------------
def _im2col(x_nhwc, kh, kw, sh, sw):
    N, H, W, C = x_nhwc.shape
    oh = (H - kh) // sh + 1
    ow = (W - kw) // sw + 1
    cols = []
    for i in range(kh):
        for j in range(kw):
            cols.append(x_nhwc[:, i:i + sh * (oh - 1) + 1:sh,
                               j:j + sw * (ow - 1) + 1:sw, :])
    p = jnp.stack(cols, axis=3).reshape(N * oh * ow, kh * kw * C)
    return p, oh, ow


def conv_relu_bn(x_nhwc, cp, *, tm=128):
    kh, kw = cp["kh"], cp["kw"]
    sh, sw = cp["stride"]
    patches, oh, ow = _im2col(x_nhwc, kh, kw, sh, sw)
    M, K = patches.shape
    Mp = _round_up(M, tm)
    Kp = cp["w"].shape[0]
    a = jnp.pad(patches, ((0, Mp - M), (0, Kp - K))).astype(jnp.bfloat16)
    y = conv_matmul(a, cp["w"], cp["bias"], cp["scale"], cp["shift"], tm=tm)
    oc = cp["oc"]
    return y[:M, :oc].reshape(x_nhwc.shape[0], oh, ow, oc)


# -----------------------------------------------------------------------------
# Parameters: deterministic synthetic init + one-time device-ready preparation.
# -----------------------------------------------------------------------------
def init_params(key, input_dim, hidden_dim, kernel_size, levels):
    keys = list(jax.random.split(key, 40))
    ki = [0]

    def nk():
        k = keys[ki[0]]
        ki[0] += 1
        return k

    dims = [input_dim] + list(hidden_dim)
    convs = []
    for l in range(4):
        cin, cout = dims[l], dims[l + 1]
        kh, kw = kernel_size[l]
        convs.append(dict(
            w=0.05 * jax.random.normal(nk(), (cout, cin, kh, kw), jnp.float32),
            b=0.05 * jax.random.normal(nk(), (cout,), jnp.float32),
            gamma=1.0 + 0.1 * jax.random.normal(nk(), (cout,), jnp.float32),
            beta=0.1 * jax.random.normal(nk(), (cout,), jnp.float32),
            rmean=0.1 * jax.random.normal(nk(), (cout,), jnp.float32),
            rvar=jax.random.uniform(nk(), (cout,), jnp.float32, 0.5, 1.5),
        ))

    ln_in = sum(hidden_dim[-1] * i * i for i in levels)
    ln1 = dict(
        w=0.05 * jax.random.normal(nk(), (100, ln_in), jnp.float32),
        b=0.05 * jax.random.normal(nk(), (100,), jnp.float32),
        gamma=1.0 + 0.1 * jax.random.normal(nk(), (100,), jnp.float32),
        beta=0.1 * jax.random.normal(nk(), (100,), jnp.float32),
        rmean=0.1 * jax.random.normal(nk(), (100,), jnp.float32),
        rvar=jax.random.uniform(nk(), (100,), jnp.float32, 0.5, 1.5),
    )
    ln2 = dict(
        w=0.05 * jax.random.normal(nk(), (1, 100), jnp.float32),
        b=0.05 * jax.random.normal(nk(), (1,), jnp.float32),
    )
    return dict(convs=convs, ln1=ln1, ln2=ln2)


def prepare_params(params, stride, eps=1e-5):
    """Hoists all constant work out of the forward: weight permute to match
    (kh,kw,C) im2col order, padding to lane multiples, BN folding, bf16 cast."""
    prepped = {"convs": []}
    for l, cp in enumerate(params["convs"]):
        w = cp["w"]                                   # (OC, IC, KH, KW)
        oc, ic, kh, kw = w.shape
        K = ic * kh * kw
        Kp, Np = _round_up(K, 128), _round_up(oc, 128)
        # (KH, KW, IC, OC) flatten matches im2col (kh, kw, C) feature order
        wm = w.transpose(2, 3, 1, 0).reshape(K, oc)
        w_pad = jnp.zeros((Kp, Np), jnp.bfloat16).at[:K, :oc].set(
            wm.astype(jnp.bfloat16))
        scale = cp["gamma"] / jnp.sqrt(cp["rvar"] + eps)
        shift = cp["beta"] - cp["rmean"] * scale
        prepped["convs"].append(dict(
            w=w_pad,
            bias=jnp.zeros((1, Np), jnp.float32).at[0, :oc].set(cp["b"]),
            scale=jnp.ones((1, Np), jnp.float32).at[0, :oc].set(scale),
            shift=jnp.zeros((1, Np), jnp.float32).at[0, :oc].set(shift),
            kh=kh, kw=kw, stride=stride[l], oc=oc,
        ))

    lp, lp2 = params["ln1"], params["ln2"]
    N1, K1 = lp["w"].shape                            # (100, ln_in)
    K1p, N1p = _round_up(K1, 128), _round_up(N1, 128)
    N2 = lp2["w"].shape[0]                            # 1
    N2p = _round_up(N2, 128)
    w1 = jnp.zeros((K1p, N1p), jnp.bfloat16).at[:K1, :N1].set(
        lp["w"].T.astype(jnp.bfloat16))
    w2 = jnp.zeros((N1p, N2p), jnp.bfloat16).at[:N1, :N2].set(
        lp2["w"].T.astype(jnp.bfloat16))
    scale1 = lp["gamma"] / jnp.sqrt(lp["rvar"] + eps)
    shift1 = lp["beta"] - lp["rmean"] * scale1
    prepped["fc"] = dict(
        w1=w1,
        b1=jnp.zeros((1, N1p), jnp.float32).at[0, :N1].set(lp["b"]),
        scale1=jnp.ones((1, N1p), jnp.float32).at[0, :N1].set(scale1),
        shift1=jnp.zeros((1, N1p), jnp.float32).at[0, :N1].set(shift1),
        w2=w2,
        b2=jnp.zeros((1, N2p), jnp.float32).at[0, :N2].set(lp2["b"]),
        k_in=K1,
    )
    return prepped


# -----------------------------------------------------------------------------
# Forward pass.
# -----------------------------------------------------------------------------
def cnn_forward(prepped, x_nchw, levels, sigmoid=True):
    # layout: PyTorch NCHW input -> NHWC internally.
    x = jnp.transpose(x_nchw, (0, 2, 3, 1)).astype(jnp.float32)

    for cp in prepped["convs"]:
        x = conv_relu_bn(x, cp)

    # Spatial pyramid pooling (PyTorch (C, lh, lw) flatten order).
    N = x.shape[0]
    feats = [spp_max_pool(x, lv) for lv in levels]
    x = jnp.concatenate(feats, axis=1)

    # Fused FC head: Linear->ReLU->BN1d (eval) ->Dropout(id) ->Linear (+sigmoid)
    fc = prepped["fc"]
    Mp = _round_up(N, 8)
    Kp = fc["w1"].shape[0]
    xin = jnp.pad(x, ((0, Mp - N), (0, Kp - x.shape[1]))).astype(jnp.bfloat16)
    out = fused_fc(xin, fc["w1"], fc["b1"], fc["scale1"], fc["shift1"],
                   fc["w2"], fc["b2"], sigmoid=sigmoid)
    return out[:N, 0]


if __name__ == "__main__":
    # Reduced-size config (supported by the module's constructor):
    input_dim = 4
    hidden_dim = [16, 16, 16, 8]
    kernel_size = [(5, 5), (5, 5), (3, 3), (3, 3)]
    stride = [(2, 2), (1, 1), (1, 1), (1, 1)]
    levels = [4]

    key = jax.random.PRNGKey(0)
    kp, kx = jax.random.split(key)
    params = init_params(kp, input_dim, hidden_dim, kernel_size, levels)
    prepped = prepare_params(params, stride)

    # Spatial 35 -> conv stack -> 16 -> 12 -> 10 -> 8; SPP level 4 pools 2x2.
    x = jax.random.normal(kx, (2, input_dim, 35, 35), jnp.float32)

    out = cnn_forward(prepped, x, levels, sigmoid=True)
    out = jax.block_until_ready(out)
    assert out.shape == (2,), out.shape
    assert bool(jnp.all(jnp.isfinite(out)))
    print("KERNEL_OK")
</pallas_src>

<mosaic_0001>
module attributes {stable_mosaic.version = 11 : i64} {
  func.func @_conv_mm_kernel(%arg0: i32, %arg1: memref<128x128xbf16, #tpu.memory_space<vmem>>, %arg2: memref<128x128xbf16, #tpu.memory_space<vmem>>, %arg3: memref<1x128xf32, #tpu.memory_space<vmem>>, %arg4: memref<1x128xf32, #tpu.memory_space<vmem>>, %arg5: memref<1x128xf32, #tpu.memory_space<vmem>>, %arg6: memref<128x128xf32, #tpu.memory_space<vmem>>) attributes {dimension_semantics = [#tpu.dimension_semantics<parallel>], iteration_bounds = array<i64: 4>, scalar_prefetch = 0 : i64, scratch_operands = 0 : i64, tpu.core_type = #tpu.core_type<tc>, window_params = [{transform_indices = @transform_0, window_bounds = array<i64: 128, 128>}, {pipeline_mode = #tpu.pipeline_mode<synchronous>, transform_indices = @transform_1, window_bounds = array<i64: 128, 128>}, {pipeline_mode = #tpu.pipeline_mode<synchronous>, transform_indices = @transform_2, window_bounds = array<i64: 1, 128>}, {pipeline_mode = #tpu.pipeline_mode<synchronous>, transform_indices = @transform_3, window_bounds = array<i64: 1, 128>}, {pipeline_mode = #tpu.pipeline_mode<synchronous>, transform_indices = @transform_4, window_bounds = array<i64: 1, 128>}, {transform_indices = @transform_5, window_bounds = array<i64: 128, 128>}]} {
    %c0 = arith.constant 0 : index
    %c0_0 = arith.constant 0 : index
    %0 = vector.load %arg1[%c0, %c0_0] : memref<128x128xbf16, #tpu.memory_space<vmem>>, vector<128x128xbf16>
    %c0_1 = arith.constant 0 : index
    %c0_2 = arith.constant 0 : index
    %1 = vector.load %arg2[%c0_1, %c0_2] : memref<128x128xbf16, #tpu.memory_space<vmem>>, vector<128x128xbf16>
    %cst = arith.constant dense<0.000000e+00> : vector<128x128xf32>
    %2 = tpu.matmul %0, %1, %cst {dimension_numbers = #tpu.dot_dimension_numbers<[1], [0], [0], [1], [0, 0, 1, 1], [], []>} : vector<128x128xbf16>, vector<128x128xbf16>, vector<128x128xf32> -> vector<128x128xf32>
    %c0_3 = arith.constant 0 : index
    %c0_4 = arith.constant 0 : index
    %3 = vector.load %arg3[%c0_3, %c0_4] : memref<1x128xf32, #tpu.memory_space<vmem>>, vector<1x128xf32>
    %4 = vector.broadcast %3 : vector<1x128xf32> to vector<128x128xf32>
    %5 = arith.addf %2, %4 : vector<128x128xf32>
    %cst_5 = arith.constant 0.000000e+00 : f32
    %6 = vector.broadcast %cst_5 : f32 to vector<128x128xf32>
    %7 = arith.maximumf %5, %6 : vector<128x128xf32>
    %c0_6 = arith.constant 0 : index
    %c0_7 = arith.constant 0 : index
    %8 = vector.load %arg4[%c0_6, %c0_7] : memref<1x128xf32, #tpu.memory_space<vmem>>, vector<1x128xf32>
    %9 = vector.broadcast %8 : vector<1x128xf32> to vector<128x128xf32>
    %10 = arith.mulf %7, %9 : vector<128x128xf32>
    %c0_8 = arith.constant 0 : index
    %c0_9 = arith.constant 0 : index
    %11 = vector.load %arg5[%c0_8, %c0_9] : memref<1x128xf32, #tpu.memory_space<vmem>>, vector<1x128xf32>
    %12 = vector.broadcast %11 : vector<1x128xf32> to vector<128x128xf32>
    %13 = arith.addf %10, %12 : vector<128x128xf32>
    %c0_10 = arith.constant 0 : index
    %c0_11 = arith.constant 0 : index
    %14 = vector.load %arg6[%c0_10, %c0_11] : memref<128x128xf32, #tpu.memory_space<vmem>>, vector<128x128xf32>
    tpu.vector_store %arg6[%c0_10, %c0_11], %13 {strides = array<i32>} : memref<128x128xf32, #tpu.memory_space<vmem>>, vector<128x128xf32>,
    return
  }
  func.func @transform_0(%arg0: i32) -> (i32, i32) {
    %c0_i32 = arith.constant 0 : i32
    %c0_i32_0 = arith.constant 0 : i32
    return %arg0, %c0_i32 : i32, i32
  }
  func.func @transform_1(%arg0: i32) -> (i32, i32) {
    %c0_i32 = arith.constant 0 : i32
    %c0_i32_0 = arith.constant 0 : i32
    %c0_i32_1 = arith.constant 0 : i32
    return %c0_i32, %c0_i32_0 : i32, i32
  }
  func.func @transform_2(%arg0: i32) -> (i32, i32) {
    %c0_i32 = arith.constant 0 : i32
    %c0_i32_0 = arith.constant 0 : i32
    %c0_i32_1 = arith.constant 0 : i32
    return %c0_i32, %c0_i32_0 : i32, i32
  }
  func.func @transform_3(%arg0: i32) -> (i32, i32) {
    %c0_i32 = arith.constant 0 : i32
    %c0_i32_0 = arith.constant 0 : i32
    %c0_i32_1 = arith.constant 0 : i32
    return %c0_i32, %c0_i32_0 : i32, i32
  }
  func.func @transform_4(%arg0: i32) -> (i32, i32) {
    %c0_i32 = arith.constant 0 : i32
    %c0_i32_0 = arith.constant 0 : i32
    %c0_i32_1 = arith.constant 0 : i32
    return %c0_i32, %c0_i32_0 : i32, i32
  }
  func.func @transform_5(%arg0: i32) -> (i32, i32) {
    %c0_i32 = arith.constant 0 : i32
    %c0_i32_0 = arith.constant 0 : i32
    return %arg0, %c0_i32 : i32, i32
  }
}

</mosaic_0001>

<bundles_post_ra>
// kernel: tpu_custom_call.1
= control target key start
LH: loop header
LB: loop body
LE: loop exit
PB: predicated region body
PF: predicated region fallthrough
CT: control target
= control target key end

     0   :  { %10 = vsyncpa [#allocation3], 0  ;;  %s1204_s0 = inlined_call_operand.hbm [shape: bf16[512,128], index: 0, kind: input, shape index: {}]   ;;  %s1205_s1 = inlined_call_operand.hbm [shape: bf16[128,128], index: 1, kind: input, shape index: {}]   ;;  %s1206_s2 = inlined_call_operand.vmem [shape: f32[1,128], index: 2, kind: input, shape index: {}]   ;;  %s1207_s3 = inlined_call_operand.vmem [shape: f32[1,128], index: 3, kind: input, shape index: {}]   ;;  %s1208_s4 = inlined_call_operand.vmem [shape: f32[1,128], index: 4, kind: input, shape index: {}]   ;;  %s1209_s5 = inlined_call_operand.hbm [shape: f32[512,128], index: 5, kind: output, shape index: {}]  }
   0x1   :  { %12 = vsyncpa [#allocation3 + $0x1], 0 }
   0x2   :  { %13 = vsyncpa [#allocation6], 0 }
   0x3   :  { %14 = vsyncpa [#allocation4], 0 }
   0x4   :  { %16 = vsyncpa [#allocation4 + $0x1], 0  ;;  %s969_s18 = smov 0   ;;  %s971_s19 = smov 0  }
   0x5   :  { %s973_s20 = smov 0   ;;  %s975_s21 = smov 0  }
   0x6 LB: > { %s990_s22 = sadd.s32 4294967295, %s932_s21   ;;  %s616_s23 = sadd.s32 4294967294, %s932_s21   ;;  %s932_s21 = sphi %s975_s21, %s1220_s21   ;;  %s928_s20 = sphi %s973_s20, %s1219_s20   ;;  %s924_s19 = sphi %s971_s19, %s1218_s19   ;;  %s920_s18 = sphi %s969_s18, %s1217_s18  }
   0x7   : > { %p42_p0 = scmp.ne.s32.totalorder %s924_s19, %s920_s18  ;;  %p43_p1 = scmp.eq.s32.totalorder %s990_s22, 0 }
   0x8   : > { %p150_p2 = scmp.eq.s32.totalorder %s990_s22, 3  ;;  %p156_p3 = scmp.eq.s32.totalorder %s616_s23, 3 }
   0x9   : > { %p999_p4 = por %p43_p1, %p42_p0  ;;  %p617_p5 = scmp.ge.s32.totalorder %s932_s21, 1 }
   0xa   : > { %p1004_p6 = por %p156_p3, %p42_p0  ;;  %p163_p7 = scmp.lt.s32.totalorder %s932_s21, 5 }
   0xb   : > { %s174_s28 = sshll.u32 %s1205_s1, 4  ;;  %s934_s30 = smov [#allocation5]   ;;  %s175_s28 = int_to_ptr.hbm [resolvable:$true] %s174_s28 }
   0xc   : > { %p1012_p8 = pnand %p617_p5, %p163_p7  ;;  %s176_s6 = sshll.u32 %s934_s30, 4  ;;  %s177_s6 = int_to_ptr.vmem [resolvable:$true] %s176_s6 }
   0xd   : > { %s1021_s7 = sadd.s32 1, %s932_s21   ;;  %s1210_s8 = smov 64  }
   0xe   : > { %p746_p9 = pneg %p1012_p8  ;;  %s936_s9 = smov 4  }
   0xf   : > { %s26_s10 = ssub.s32 %s932_s21, %s1021_s7  ;;  %s29_s11 = sadd.s32 1, %s928_s20 }
  0x10   : > { %p747_p10 = pnand %p746_p9, %p43_p1  ;;  %p27_p11 = scmp.eq.s32.totalorder %s26_s10, 0 }
  0x11   : > { %p36_p12 = scmp.ne.s32.totalorder %s928_s20, %s924_s19  ;;  %p37_p13 = scmp.eq.s32.totalorder %s932_s21, 0 }
  0x12   : > { %749 = dma.hbm_to_vmem [thread:$0]  (!%p747_p10), %s175_s28, 1024, %s177_s6, [#allocation6], %s1210_s8, %s1210_s8, %s936_s9  }
  0x13   : > { %s1033_s12 = scalar_select %p27_p11, %s928_s20, %s29_s11  }
  0x14   : > { %p1037_p0 = por %p150_p2, %p36_p12  ;;  %p759_p3 = scmp.lt.s32.totalorder %s932_s21, 4 }
  0x15   : > { %s199_s14 = sand.u32 1, %s928_s20   ;;  %s696_s15 = sshll.u32 %s932_s21, 6 }
  0x16   : > { %p38_p5 = por %p37_p13, %p36_p12  ;;  %s620_s16 = sshll.u32 %s199_s14, 6 }
  0x17   : > { %s208_s26 = scalar_lea.hbm %s1204_s0, %s696_s15  ;;  %s203_s28 = scalar_lea.vmem [#allocation2], %s620_s16 }
  0x18   : > { %s209_s27 = sshll.u32 %s208_s26, 4  ;;  %s211_s30 = sshll.u32 %s203_s28, 4  ;;  %s210_s27 = int_to_ptr.hbm [resolvable:$true] %s209_s27  ;;  %s212_s30 = int_to_ptr.vmem [resolvable:$true] %s211_s30 }
  0x19   : > { %p1047_p7 = pnand %p759_p3, %p38_p5  ;;  %s200_s10 = scalar_lea.sflag [#allocation3], %s199_s14 }
  0x1a   : > { %s832_s11 = sshra.s32 %s210_s27, 4  ;;  %s839_s16 = scalar_lea.hbm %s1204_s0, 256  ;;  %s833_s11 = int_to_ptr.hbm [resolvable:$true] %s832_s11 }
  0x1b   : > { %s834_s8 = scalar_lea.hbm %s833_s11, 64  ;;  %p836_p9 = pneg %p1047_p7 }
  0x1c   : > { %p835_p2 = scmp.ne.s32.totalorder %s833_s11, %s834_s8  ;;  %p840_p12 = scmp.lt.s32.totalorder %s833_s11, %s1204_s0 }
  0x1d   : > { %p841_p13 = scmp.lt.s32.totalorder %s839_s16, %s834_s8 }
  0x1e   : > { %p837_p10 = pnand %p836_p9, %p835_p2 }
  0x1f   : > { %p842_p3 = por %p841_p13, %p840_p12 }
  0x20   : > { %p838_p11 = pneg %p837_p10 }
  0x22   : > { %p843_p5 = pnand %p842_p3, %p838_p11 }
  0x24   : > { %846 = shalt.err (!%p843_p5)
}
  0x25   : > { %s1216_s14 = smov 64   ;;  %223 = sbr.rel (%p1012_p8) target bundleno = 247 (0xf7), region = 40 }
  0x26   : > { %753 = dma.hbm_to_vmem [thread:$0]  (!%p1047_p7), %s210_s27, 1024, %s212_s30, %s200_s10, %s1216_s14, %s1216_s14, %s936_s9  }
  0x27   : > { %s1067_s28 = sand.u32 (!%p1012_p8), 1, %s924_s19  }
  0x28   : > { %s624_s11 = sshll.u32 (!%p1012_p8), %s1067_s28, 6  ;;  %s226_s8 = scalar_lea.sflag (!%p1012_p8), [#allocation3], %s1067_s28 }
  0x29   : > { %s1071_s15 = scalar_lea.vmem (!%p1012_p8), [#allocation2], %s624_s11 }
  0x2a   : > { %907 = dma.done.wait (%p999_p4), %s226_s8, 1024  }
  0x2b   : > { %909 = vsyncadd (%p999_p4), %s226_s8, 4294966272 }
  0x2c   : > { %911 = dma.done.wait (%p43_p1), [#allocation6], 1024  }
  0x2d   : > { %913 = vsyncadd (%p43_p1), [#allocation6], 4294966272  ;;  %v712_v0 = vld [vmem:[#allocation5 + $0x38] sm:$0xff]  ;;  %v711_v1 = vld [vmem:[#allocation5 + $0x30] sm:$0xff]  ;;  %s626_s30 = sshll.u32 %s1067_s28, 7  ;;  %s713_s16 = sshll.u32 %s990_s22, 7 }
  0x2e   : > { %396 = vmatpush.bf16.msra.mxu0 %v712_v0  ;;  %714 = vmatpush.bf16.msra.mxu1 %v712_v0  ;;  %v710_v2 = vld [vmem:[#allocation5 + $0x28] sm:$0xff]  ;;  %v709_v3 = vld [vmem:[#allocation5 + $0x20] sm:$0xff]  ;;  %v708_v4 = vld [vmem:[#allocation5 + $0x18] sm:$0xff]  ;;  %s1113_s17 = scalar_lea.vmem [#allocation7], %s626_s30  ;;  %s529_s22 = scalar_lea.hbm %s1209_s5, %s713_s16 }
  0x2f   : > { %715 = vmatpush.bf16.msra.mxu2 %v712_v0  ;;  %716 = vmatpush.bf16.msra.mxu3 %v712_v0  ;;  %v707_v5 = vld [vmem:[#allocation5 + $0x10] sm:$0xff]  ;;  %v706_v6 = vld [vmem:[#allocation5 + $0x8] sm:$0xff]  ;;  %v705_v7 = vld [vmem:[#allocation5] sm:$0xff]  ;;  %s530_s14 = sshll.u32 %s1113_s17, 4  ;;  %s532_s11 = sshll.u32 %s529_s22, 4  ;;  %s531_s14 = int_to_ptr.vmem [resolvable:$true] %s530_s14  ;;  %s533_s11 = int_to_ptr.hbm [resolvable:$true] %s532_s11 }
  0x30   : > { %v697_v8 = vld [vmem:[%s1071_s15] sm:$0xff]  ;;  %v699_v9 = vld [vmem:[%s1071_s15 + $0x10] sm:$0xff]  ;;  %v698_v12 = vld [vmem:[%s1071_s15 + $0x8] sm:$0xff]  ;;  %s518_s8 = scalar_lea.sflag [#allocation4], %s1067_s28  ;;  %s882_s27 = scalar_lea.hbm %s1209_s5, 512 }
  0x31   : > { %v701_v10 = vld [vmem:[%s1071_s15 + $0x20] sm:$0xff]  ;;  %v703_v11 = vld [vmem:[%s1071_s15 + $0x30] sm:$0xff]  ;;  %v700_v13 = vld [vmem:[%s1071_s15 + $0x18] sm:$0xff] }
  0x32   : > { %397 = vmatpush.bf16.msra.mxu0 %v711_v1  ;;  %717 = vmatpush.bf16.msra.mxu1 %v711_v1  ;;  %v702_v14 = vld [vmem:[%s1071_s15 + $0x28] sm:$0xff]  ;;  %v704_v15 = vld [vmem:[%s1071_s15 + $0x38] sm:$0xff]  ;;  %v1092_v16 = vld [vmem:[%s1206_s2] ss:$0 sm:$0xff]  ;;  %s876_s15 = sshra.s32 %s533_s11, 4  ;;  %s877_s15 = int_to_ptr.hbm [resolvable:$true] %s876_s15 }
  0x33   : > { %718 = vmatpush.bf16.msra.mxu2 %v711_v1  ;;  %719 = vmatpush.bf16.msra.mxu3 %v711_v1  ;;  %v1098_v20 = vld [vmem:[%s1207_s3] ss:$0 sm:$0xff]  ;;  %s878_s24 = scalar_lea.hbm %s877_s15, 128  ;;  %p883_p7 = scmp.lt.s32.totalorder %s877_s15, %s1209_s5 }
  0x34   : > { %v1105_v23 = vld [vmem:[%s1208_s4] ss:$0 sm:$0xff]  ;;  %p879_p1 = scmp.ne.s32.totalorder %s877_s15, %s878_s24  ;;  %p884_p2 = scmp.lt.s32.totalorder %s882_s27, %s878_s24 }
  0x36   : > { %398 = vmatpush.bf16.msra.mxu0 %v710_v2  ;;  %720 = vmatpush.bf16.msra.mxu1 %v710_v2  ;;  %p880_p4 = pnand %p879_p1, %p1037_p0  ;;  %p885_p9 = por %p884_p2, %p883_p7 }
  0x37   : > { %721 = vmatpush.bf16.msra.mxu2 %v710_v2  ;;  %722 = vmatpush.bf16.msra.mxu3 %v710_v2 }
  0x38   : > { %p881_p8 = pneg %p880_p4 }
  0x3a   : > { %399 = vmatpush.bf16.msra.mxu0 %v709_v3  ;;  %723 = vmatpush.bf16.msra.mxu1 %v709_v3  ;;  %p886_p10 = pnand %p885_p9, %p881_p8 }
  0x3b   : > { %724 = vmatpush.bf16.msra.mxu2 %v709_v3  ;;  %725 = vmatpush.bf16.msra.mxu3 %v709_v3 }
  0x3e   : > { %400 = vmatpush.bf16.msra.mxu0 %v708_v4  ;;  %726 = vmatpush.bf16.msra.mxu1 %v708_v4 }
  0x3f   : > { %727 = vmatpush.bf16.msra.mxu2 %v708_v4  ;;  %728 = vmatpush.bf16.msra.mxu3 %v708_v4 }
  0x42   : > { %401 = vmatpush.bf16.msra.mxu0 %v707_v5  ;;  %729 = vmatpush.bf16.msra.mxu1 %v707_v5 }
  0x43   : > { %730 = vmatpush.bf16.msra.mxu2 %v707_v5  ;;  %731 = vmatpush.bf16.msra.mxu3 %v707_v5 }
  0x46   : > { %402 = vmatpush.bf16.msra.mxu0 %v706_v6  ;;  %732 = vmatpush.bf16.msra.mxu1 %v706_v6 }
  0x47   : > { %733 = vmatpush.bf16.msra.mxu2 %v706_v6  ;;  %734 = vmatpush.bf16.msra.mxu3 %v706_v6 }
  0x4a   : > { %403 = vmatpush.bf16.msra.mxu0 %v705_v7  ;;  %735 = vmatpush.bf16.msra.mxu1 %v705_v7 }
  0x4b   : > { %736 = vmatpush.bf16.msra.mxu2 %v705_v7  ;;  %737 = vmatpush.bf16.msra.mxu3 %v705_v7 }
  0x4d   : > { %404 = vmatmul.bf16.vlgmr.msra.gmra.mxu0 %v697_v8  ;;  %414 = vmatmul.bf16.vlgmr.msra.gmra.mxu1 %v699_v9 }
  0x4e   : > { %424 = vmatmul.bf16.vlgmr.msra.gmra.mxu2 %v701_v10  ;;  %434 = vmatmul.bf16.vlgmr.msra.gmra.mxu3 %v703_v11 }
  0x5d   : > { %409 = vmatmul.bf16.gmra.mxu0 %v698_v12  ;;  %419 = vmatmul.bf16.gmra.mxu1 %v700_v13 }
  0x5e   : > { %429 = vmatmul.bf16.gmra.mxu2 %v702_v14  ;;  %439 = vmatmul.bf16.gmra.mxu3 %v704_v15 }
  0xca   : > { %v405_v17 = vpop.f32.mrf.mxu0  ;;  %v415_v18 = vpop.f32.mrf.mxu1 }
  0xcb   : > { %v406_v19 = vadd.f32 %v1092_v16, %v405_v17  ;;  %v416_v21 = vadd.f32 %v1092_v16, %v415_v18 }
  0xcd   : > { %v445_v22 = vmax.f32 %v406_v19, 0.0  ;;  %v449_v24 = vmax.f32 %v416_v21, 0.0 }
  0xcf   : > { %v465_v25 = vmul.f32 %v1098_v20, %v445_v22  ;;  %v469_v26 = vmul.f32 %v1098_v20, %v449_v24 }
  0xd1   : > { %v485_v27 = vadd.f32 %v1105_v23, %v465_v25  ;;  %v489_v28 = vadd.f32 %v1105_v23, %v469_v26  ;;  %v425_v29 = vpop.f32.mrf.mxu2  ;;  %v435_v30 = vpop.f32.mrf.mxu3 }
  0xd2   : > { %v426_v31 = vadd.f32 %v1092_v16, %v425_v29  ;;  %v436_v32 = vadd.f32 %v1092_v16, %v435_v30  ;;  %v407_v33 = vpop.f32.mrf.mxu0  ;;  %v417_v34 = vpop.f32.mrf.mxu1 }
  0xd3   : > { %501 = vst [vmem:[%s1113_s17] sm:$0xff] %v485_v27  ;;  %v408_v35 = vadd.f32 %v1092_v16, %v407_v33  ;;  %v418_v36 = vadd.f32 %v1092_v16, %v417_v34 }
  0xd4   : > { %505 = vst [vmem:[%s1113_s17 + $0x20] sm:$0xff] %v489_v28  ;;  %v453_v37 = vmax.f32 %v426_v31, 0.0  ;;  %v457_v38 = vmax.f32 %v436_v32, 0.0 }
  0xd5   : > { %v446_v39 = vmax.f32 %v408_v35, 0.0  ;;  %v450_v40 = vmax.f32 %v418_v36, 0.0 }
  0xd6   : > { %v473_v41 = vmul.f32 %v1098_v20, %v453_v37  ;;  %v477_v42 = vmul.f32 %v1098_v20, %v457_v38 }
  0xd7   : > { %v466_v43 = vmul.f32 %v1098_v20, %v446_v39  ;;  %v470_v44 = vmul.f32 %v1098_v20, %v450_v40 }
  0xd8   : > { %v493_v45 = vadd.f32 %v1105_v23, %v473_v41  ;;  %v497_v46 = vadd.f32 %v1105_v23, %v477_v42 }
  0xd9   : > { %v486_v47 = vadd.f32 %v1105_v23, %v466_v43  ;;  %v490_v48 = vadd.f32 %v1105_v23, %v470_v44  ;;  %v427_v49 = vpop.f32.mrf.mxu2  ;;  %v437_v50 = vpop.f32.mrf.mxu3 }
  0xda   : > { %509 = vst [vmem:[%s1113_s17 + $0x40] sm:$0xff] %v493_v45  ;;  %v428_v51 = vadd.f32 %v1092_v16, %v427_v49  ;;  %v438_v52 = vadd.f32 %v1092_v16, %v437_v50  ;;  %v410_v53 = vpop.f32.mrf.mxu0  ;;  %v420_v54 = vpop.f32.mrf.mxu1 }
  0xdb   : > { %513 = vst [vmem:[%s1113_s17 + $0x60] sm:$0xff] %v497_v46  ;;  %v411_v55 = vadd.f32 %v1092_v16, %v410_v53  ;;  %v421_v56 = vadd.f32 %v1092_v16, %v420_v54 }
  0xdc   : > { %502 = vst [vmem:[%s1113_s17 + $0x8] sm:$0xff] %v486_v47  ;;  %v454_v57 = vmax.f32 %v428_v51, 0.0  ;;  %v458_v58 = vmax.f32 %v438_v52, 0.0 }
  0xdd   : > { %506 = vst [vmem:[%s1113_s17 + $0x28] sm:$0xff] %v490_v48  ;;  %v447_v59 = vmax.f32 %v411_v55, 0.0  ;;  %v451_v60 = vmax.f32 %v421_v56, 0.0 }
  0xde   : > { %v474_v61 = vmul.f32 %v1098_v20, %v454_v57  ;;  %v478_v62 = vmul.f32 %v1098_v20, %v458_v58 }
  0xdf   : > { %v467_v63 = vmul.f32 %v1098_v20, %v447_v59  ;;  %v471_v0 = vmul.f32 %v1098_v20, %v451_v60 }
  0xe0   : > { %v494_v1 = vadd.f32 %v1105_v23, %v474_v61  ;;  %v498_v2 = vadd.f32 %v1105_v23, %v478_v62 }
  0xe1   : > { %v487_v3 = vadd.f32 %v1105_v23, %v467_v63  ;;  %v491_v4 = vadd.f32 %v1105_v23, %v471_v0  ;;  %v430_v5 = vpop.f32.mrf.mxu2  ;;  %v440_v6 = vpop.f32.mrf.mxu3 }
  0xe2   : > { %510 = vst [vmem:[%s1113_s17 + $0x48] sm:$0xff] %v494_v1  ;;  %v431_v7 = vadd.f32 %v1092_v16, %v430_v5  ;;  %v441_v8 = vadd.f32 %v1092_v16, %v440_v6  ;;  %v412_v9 = vpop.f32.mrf.mxu0  ;;  %v422_v10 = vpop.f32.mrf.mxu1 }
  0xe3   : > { %514 = vst [vmem:[%s1113_s17 + $0x68] sm:$0xff] %v498_v2  ;;  %v413_v11 = vadd.f32 %v1092_v16, %v412_v9  ;;  %v423_v12 = vadd.f32 %v1092_v16, %v422_v10 }
  0xe4   : > { %503 = vst [vmem:[%s1113_s17 + $0x10] sm:$0xff] %v487_v3  ;;  %v455_v13 = vmax.f32 %v431_v7, 0.0  ;;  %v459_v14 = vmax.f32 %v441_v8, 0.0 }
  0xe5   : > { %507 = vst [vmem:[%s1113_s17 + $0x30] sm:$0xff] %v491_v4  ;;  %v448_v15 = vmax.f32 %v413_v11, 0.0  ;;  %v452_v17 = vmax.f32 %v423_v12, 0.0 }
  0xe6   : > { %v475_v18 = vmul.f32 %v1098_v20, %v455_v13  ;;  %v479_v19 = vmul.f32 %v1098_v20, %v459_v14 }
  0xe7   : > { %v468_v21 = vmul.f32 %v1098_v20, %v448_v15  ;;  %v472_v22 = vmul.f32 %v1098_v20, %v452_v17 }
  0xe8   : > { %v495_v24 = vadd.f32 %v1105_v23, %v475_v18  ;;  %v499_v25 = vadd.f32 %v1105_v23, %v479_v19 }
  0xe9   : > { %v488_v26 = vadd.f32 %v1105_v23, %v468_v21  ;;  %v492_v27 = vadd.f32 %v1105_v23, %v472_v22  ;;  %v432_v28 = vpop.f32.mrf.mxu2  ;;  %v442_v29 = vpop.f32.mrf.mxu3 }
  0xea   : > { %511 = vst [vmem:[%s1113_s17 + $0x50] sm:$0xff] %v495_v24  ;;  %v433_v30 = vadd.f32 %v1092_v16, %v432_v28  ;;  %v443_v31 = vadd.f32 %v1092_v16, %v442_v29 }
  0xeb   : > { %515 = vst [vmem:[%s1113_s17 + $0x70] sm:$0xff] %v499_v25 }
  0xec   : > { %504 = vst [vmem:[%s1113_s17 + $0x18] sm:$0xff] %v488_v26  ;;  %v456_v32 = vmax.f32 %v433_v30, 0.0  ;;  %v460_v33 = vmax.f32 %v443_v31, 0.0 }
  0xed   : > { %508 = vst [vmem:[%s1113_s17 + $0x38] sm:$0xff] %v492_v27 }
  0xee   : > { %v476_v34 = vmul.f32 %v1098_v20, %v456_v32  ;;  %v480_v35 = vmul.f32 %v1098_v20, %v460_v33 }
  0xf0   : > { %v496_v16 = vadd.f32 %v1105_v23, %v476_v34  ;;  %v500_v36 = vadd.f32 %v1105_v23, %v480_v35 }
  0xf2   : > { %512 = vst [vmem:[%s1113_s17 + $0x58] sm:$0xff] %v496_v16 }
  0xf3   : > { %516 = vst [vmem:[%s1113_s17 + $0x78] sm:$0xff] %v500_v36 }
  0xf4   : > { %889 = shalt.err (!%p886_p10)
}
  0xf5   : > { %s937_s28 = smov 128   ;;  %s938_s10 = smov 8  }
  0xf6   : > { %744 = dma.vmem_to_hbm [thread:$0]  (%p1037_p0), %s531_s14, 2048, %s533_s11, %s518_s8, %s937_s28, %s937_s28, %s938_s10  }
  0xf7 PF: > { %p761_p11 = scmp.ge.s32.totalorder %s932_s21, 2  ;;  %s547_s17 = sand.u32 1, %s920_s18  }
  0xf8   : > { %s548_s16 = scalar_lea.sflag [#allocation4], %s547_s17 }
  0xf9   : > { %p755_p12 = pnand %p761_p11, %p1004_p6 }
  0xfb   : > { %p756_p13 = pneg %p755_p12 }
  0xfd   : > { %915 = dma.done.wait (%p756_p13), %s548_s16, 2048  }
  0xfe   : > { %917 = vsyncadd (%p756_p13), %s548_s16, 4294965248  ;;  %p19_p3 = scmp.ge.s32.totalorder %s1021_s7, 6   ;;  %s1217_s18 = smov %s924_s19 }
  0xff   : > { %s1218_s19 = smov %s928_s20  ;;  %s1219_s20 = smov %s1033_s12 }
 0x100   : > { %s1220_s21 = smov %s1021_s7  ;;  %21 = sbr.rel (!%p19_p3) target bundleno = 6 (0x6), region = 89 }
 0x105   :  { %554 = vsyncpa [#allocation3], 1 }
 0x106   :  { %556 = vsyncpa [#allocation3 + $0x1], 1 }
 0x107   :  { %557 = vsyncpa [#allocation6], 1 }
 0x108   :  { %558 = vsyncpa [#allocation4], 1 }
 0x109   :  { %560 = vsyncpa [#allocation4 + $0x1], 1 }

</bundles_post_ra>
